<compile_context>
chip_gen: v6e
topology: v6e:2x2x1
jax: 0.10.0
libtpu: 0.0.40
codegen_flags: <defaults>
</compile_context>

<pallas_src>
import numpy as np
import jax
import jax.numpy as jnp
from jax.experimental import pallas as pl
from jax.experimental.pallas import tpu as pltpu

EPS = 1e-15

# Fixed (non-trainable) edge kernels from the PyTorch module __init__
# (used only by the pure-JAX reference; the kernel uses their separable form).
_KX = np.array([[-1, -1, -1, 0, 1, 1, 1]] * 7, dtype=np.float32)              # d/dx
_KY = np.array([[-1] * 7] * 3 + [[0] * 7] + [[1] * 7] * 3, dtype=np.float32)  # d/dy


def _loss_kernel(inp_ref, tgt_ref, out_ref, pad_ref):
    """One block of Bb batch elements per grid step.

    inp_ref : (Bb, C, H, W)       logits (any float dtype; cast to f32 here)
    tgt_ref : (Bb, H, W)          bf16 {0,1} target (unpadded)
    out_ref : (Bb, 8, 128)        lane 0 = sigmoid(pos_loss), lanes >=1 = neg
    pad_ref : (Bb, H+6, W+6) f32  scratch holding the 3-px zero-padded target
    """
    Bb, C, H, W = inp_ref.shape

    # ---- target + in-kernel 3-px zero halo ---------------------------------
    t = tgt_ref[...].astype(jnp.float32)                       # (Bb, H, W)
    pad_ref[...] = jnp.zeros(pad_ref.shape, jnp.float32)       # cheap vs rest
    pad_ref[:, 3:3 + H, 3:3 + W] = t
    tpad = pad_ref[...]                                        # (Bb, H+6, W+6)

    # ---- separable 7x7 +-1 edge stencils (cross-correlation, padding=3) ----
    # KX = ones(7,1) x [-1,-1,-1,0,1,1,1];  KY = KX^T.
    rs = tpad[:, 0:H, :]
    for u in range(1, 7):                                      # 7-row running sum
        rs = rs + tpad[:, u:u + H, :]                          # (Bb, H, W+6)
    gx = ((rs[:, :, 4:4 + W] + rs[:, :, 5:5 + W] + rs[:, :, 6:6 + W])
          - (rs[:, :, 0:0 + W] + rs[:, :, 1:1 + W] + rs[:, :, 2:2 + W]))

    cs = tpad[:, :, 0:W]
    for v in range(1, 7):                                      # 7-col running sum
        cs = cs + tpad[:, :, v:v + W]                          # (Bb, H+6, W)
    gy = ((cs[:, 4:4 + H, :] + cs[:, 5:5 + H, :] + cs[:, 6:6 + H, :])
          - (cs[:, 0:0 + H, :] + cs[:, 1:1 + H, :] + cs[:, 2:2 + H, :]))

    edge = jnp.sqrt(gx * gx + gy * gy + EPS)                   # (Bb, H, W)

    # fused weighting: target + target*edge*0.005, neg_target + neg*edge*0.2
    t_w = t * (1.0 + 0.005 * edge)
    n_w = (1.0 - t) * (1.0 + 0.2 * edge)

    # ---- channel softmax (loss only consumes channels 0 and 1) -------------
    x = inp_ref[...].astype(jnp.float32)                       # (Bb, C, H, W)
    if C == 2:
        p0 = jax.nn.sigmoid(x[:, 0] - x[:, 1])                 # softmax(...)[0]
        p1 = 1.0 - p0                                          # one EUP sigmoid
    else:
        m = jnp.max(x, axis=1, keepdims=True)
        e = jnp.exp(x - m)
        inv = 1.0 / jnp.sum(e, axis=1, keepdims=True)
        p0 = (e * inv)[:, 0]
        p1 = (e * inv)[:, 1]

    # ---- per-element sums: rows first (VPU adds), tiny lane reduce last ----
    def shw(a):                                                # (Bb,H,W)->(Bb,1,1)
        return jnp.sum(jnp.sum(a, axis=1, keepdims=True), axis=2, keepdims=True)

    s_p0nw = shw(p0 * n_w)
    s_nw = shw(n_w)
    s_p1tw = shw(p1 * t_w)
    s_tw = shw(t_w)
    s_neg = shw((p0 * t_w) ** 2 + (p1 * n_w) ** 2)             # fused: 5 passes

    # NOTE: all-ones / all-zeros targets make s_nw or s_tw zero -> inf/NaN,
    # exactly matching the PyTorch reference behaviour (no extra guard added).
    pos1 = (1.0 - (s_p0nw + EPS) / s_nw) ** 2
    pos2 = (1.0 - (s_p1tw + EPS) / s_tw) ** 2
    pos_val = jax.nn.sigmoid((pos1 + pos2) * 0.5)                            # (Bb,1,1)
    neg_val = jax.nn.sigmoid(jnp.log(jnp.log(s_neg * 0.5 + 1.0) + 1.0) + 1.0)

    # lane-dense packed output: lane 0 = pos, lanes 1..127 = copies of neg
    lane = jax.lax.broadcasted_iota(jnp.int32, (Bb, 8, 128), 2)
    out_ref[...] = jnp.where(lane == 0, pos_val, neg_val)


def my_loss_with_edge(logits, target, *, block_b=None):
    """logits: (B, C, H, W) float (f32 or bf16); target: (B, H, W) {0,1}.

    Returns the scalar loss of MyLossWithEdge.forward.
    """
    B, C, H, W = logits.shape
    assert target.shape == (B, H, W)

    # Binary masks are exact in bf16 -> half the target DMA bytes, no wrapper pad.
    tgt = target.astype(jnp.bfloat16)

    # rough per-batch-element VMEM working set (live f32 temporaries dominate)
    per_elem = (C * H * W * (logits.dtype.itemsize + 4)    # logits in + f32 cast
                + (H + 6) * (W + 6) * 4                    # padded-target scratch
                + 14 * H * W * 4)                          # live f32 temporaries

    if block_b is None:
        bb = max(1, min(B, (16 << 20) // max(per_elem, 1)))
        if B >= 2:
            bb = min(bb, B // 2)      # keep >= 2 grid steps (feeds both v7x TCs)
        while B % bb:                 # largest divisor of B not above the budget
            bb -= 1
        block_b = bb
    assert B % block_b == 0
    grid = (B // block_b,)

    vmem_limit = int(min(max(2 * block_b * per_elem + (4 << 20), 16 << 20), 48 << 20))

    out = pl.pallas_call(
        _loss_kernel,
        out_shape=jax.ShapeDtypeStruct((B, 8, 128), jnp.float32),
        grid=grid,
        in_specs=[
            pl.BlockSpec((block_b, C, H, W), lambda g: (g, 0, 0, 0)),
            pl.BlockSpec((block_b, H, W), lambda g: (g, 0, 0)),
        ],
        out_specs=pl.BlockSpec((block_b, 8, 128), lambda g: (g, 0, 0)),
        scratch_shapes=[pltpu.VMEM((block_b, H + 6, W + 6), jnp.float32)],
        compiler_params=pltpu.CompilerParams(
            dimension_semantics=("parallel",),
            vmem_limit_bytes=vmem_limit),
    )(logits, tgt)

    pos = out[:, 0, 0]                # sigmoid(pos_loss) per batch element
    neg = out[:, 0, 1]                # transformed neg_loss per batch element
    return (jnp.mean(pos) + jnp.mean(neg)) * 0.5


def _reference(logits, target):
    """Pure-JAX reference mirroring the PyTorch forward, for validation."""
    target = target.astype(jnp.float32)
    p = jax.nn.softmax(logits.astype(jnp.float32), axis=1)
    neg_target = 1.0 - target
    tpad = jnp.pad(target, ((0, 0), (3, 3), (3, 3)))
    B, H, W = target.shape
    gx = jnp.zeros((B, H, W), jnp.float32)
    gy = jnp.zeros((B, H, W), jnp.float32)
    for u in range(7):
        for v in range(7):
            win = tpad[:, u:u + H, v:v + W]
            gx = gx + float(_KX[u, v]) * win
            gy = gy + float(_KY[u, v]) * win
    edge = jnp.sqrt(gx ** 2 + gy ** 2 + EPS)
    t_w = target + target * (edge * 0.005)
    n_w = neg_target + neg_target * (edge * 0.2)
    s = lambda a: jnp.sum(a, axis=(1, 2))
    pos1 = (1.0 - (s(p[:, 0] * n_w) + EPS) / s(n_w)) ** 2
    pos2 = (1.0 - (s(p[:, 1] * t_w) + EPS) / s(t_w)) ** 2
    pos_loss = (pos1 + pos2) / 2.0
    neg_loss = (s((p[:, 0] * t_w) ** 2) + s((p[:, 1] * n_w) ** 2)) / 2.0
    neg_loss = jax.nn.sigmoid(jnp.log(jnp.log(neg_loss + 1.0) + 1.0) + 1.0)
    pos_loss = jax.nn.sigmoid(pos_loss)
    return (jnp.mean(pos_loss) + jnp.mean(neg_loss)) / 2.0


if __name__ == "__main__":
    B, C, H, W = 2, 2, 16, 16
    key = jax.random.PRNGKey(0)
    k1, k2 = jax.random.split(key)
    logits = jax.random.normal(k1, (B, C, H, W), dtype=jnp.float32)
    target = (jax.random.uniform(k2, (B, H, W)) > 0.5).astype(jnp.float32)

    # f32 logits: strict check against the f32 reference.
    loss = jax.block_until_ready(my_loss_with_edge(logits, target))
    ref = jax.block_until_ready(_reference(logits, target))
    assert np.allclose(np.asarray(loss), np.asarray(ref), rtol=1e-4, atol=1e-4), (
        float(loss), float(ref))

    # bf16 logits (the intended production dtype — halves HBM traffic):
    # compare against the reference evaluated on the same bf16-rounded logits.
    logits_bf16 = logits.astype(jnp.bfloat16)
    loss_bf = jax.block_until_ready(my_loss_with_edge(logits_bf16, target))
    ref_bf = jax.block_until_ready(
        _reference(logits_bf16.astype(jnp.float32), target))
    assert np.allclose(np.asarray(loss_bf), np.asarray(ref_bf),
                       rtol=1e-3, atol=1e-3), (float(loss_bf), float(ref_bf))

    print("KERNEL_OK")
</pallas_src>

<mosaic_0001>
module attributes {stable_mosaic.version = 11 : i64} {
  func.func @_loss_kernel(%arg0: i32, %arg1: memref<1x2x16x16xf32, #tpu.memory_space<vmem>>, %arg2: memref<1x16x16xbf16, #tpu.memory_space<vmem>>, %arg3: memref<1x8x128xf32, #tpu.memory_space<vmem>>, %arg4: memref<1x22x22xf32, #tpu.memory_space<vmem>>) attributes {dimension_semantics = [#tpu.dimension_semantics<parallel>], iteration_bounds = array<i64: 2>, scalar_prefetch = 0 : i64, scratch_operands = 1 : i64, tpu.core_type = #tpu.core_type<tc>, window_params = [{transform_indices = @transform_0, window_bounds = array<i64: 1, 2, 16, 16>}, {transform_indices = @transform_1, window_bounds = array<i64: 1, 16, 16>}, {transform_indices = @transform_2, window_bounds = array<i64: 1, 8, 128>}]} {
    %c0 = arith.constant 0 : index
    %c0_0 = arith.constant 0 : index
    %c0_1 = arith.constant 0 : index
    %0 = vector.load %arg2[%c0, %c0_0, %c0_1] : memref<1x16x16xbf16, #tpu.memory_space<vmem>>, vector<1x16x16xbf16>
    %1 = arith.extf %0 : vector<1x16x16xbf16> to vector<1x16x16xf32>
    %cst = arith.constant 0.000000e+00 : f32
    %2 = vector.broadcast %cst : f32 to vector<1x22x22xf32>
    %c0_2 = arith.constant 0 : index
    %c0_3 = arith.constant 0 : index
    %c0_4 = arith.constant 0 : index
    %3 = vector.load %arg4[%c0_2, %c0_3, %c0_4] : memref<1x22x22xf32, #tpu.memory_space<vmem>>, vector<1x22x22xf32>
    tpu.vector_store %arg4[%c0_2, %c0_3, %c0_4], %2 {strides = array<i32>} : memref<1x22x22xf32, #tpu.memory_space<vmem>>, vector<1x22x22xf32>,
    %c0_5 = arith.constant 0 : index
    %c3 = arith.constant 3 : index
    %c3_6 = arith.constant 3 : index
    %4 = vector.load %arg4[%c0_5, %c3, %c3_6] : memref<1x22x22xf32, #tpu.memory_space<vmem>>, vector<1x16x16xf32>
    tpu.vector_store %arg4[%c0_5, %c3, %c3_6], %1 {strides = array<i32>} : memref<1x22x22xf32, #tpu.memory_space<vmem>>, vector<1x16x16xf32>,
    %c0_7 = arith.constant 0 : index
    %c0_8 = arith.constant 0 : index
    %c0_9 = arith.constant 0 : index
    %5 = vector.load %arg4[%c0_7, %c0_8, %c0_9] : memref<1x22x22xf32, #tpu.memory_space<vmem>>, vector<1x22x22xf32>
    %6 = vector.extract_strided_slice %5 {offsets = [0, 0, 0], sizes = [1, 16, 22], strides = [1, 1, 1]} : vector<1x22x22xf32> to vector<1x16x22xf32>
    %7 = vector.extract_strided_slice %5 {offsets = [0, 1, 0], sizes = [1, 16, 22], strides = [1, 1, 1]} : vector<1x22x22xf32> to vector<1x16x22xf32>
    %8 = arith.addf %6, %7 : vector<1x16x22xf32>
    %9 = vector.extract_strided_slice %5 {offsets = [0, 2, 0], sizes = [1, 16, 22], strides = [1, 1, 1]} : vector<1x22x22xf32> to vector<1x16x22xf32>
    %10 = arith.addf %8, %9 : vector<1x16x22xf32>
    %11 = vector.extract_strided_slice %5 {offsets = [0, 3, 0], sizes = [1, 16, 22], strides = [1, 1, 1]} : vector<1x22x22xf32> to vector<1x16x22xf32>
    %12 = arith.addf %10, %11 : vector<1x16x22xf32>
    %13 = vector.extract_strided_slice %5 {offsets = [0, 4, 0], sizes = [1, 16, 22], strides = [1, 1, 1]} : vector<1x22x22xf32> to vector<1x16x22xf32>
    %14 = arith.addf %12, %13 : vector<1x16x22xf32>
    %15 = vector.extract_strided_slice %5 {offsets = [0, 5, 0], sizes = [1, 16, 22], strides = [1, 1, 1]} : vector<1x22x22xf32> to vector<1x16x22xf32>
    %16 = arith.addf %14, %15 : vector<1x16x22xf32>
    %17 = vector.extract_strided_slice %5 {offsets = [0, 6, 0], sizes = [1, 16, 22], strides = [1, 1, 1]} : vector<1x22x22xf32> to vector<1x16x22xf32>
    %18 = arith.addf %16, %17 : vector<1x16x22xf32>
    %19 = vector.extract_strided_slice %18 {offsets = [0, 0, 4], sizes = [1, 16, 16], strides = [1, 1, 1]} : vector<1x16x22xf32> to vector<1x16x16xf32>
    %20 = vector.extract_strided_slice %18 {offsets = [0, 0, 5], sizes = [1, 16, 16], strides = [1, 1, 1]} : vector<1x16x22xf32> to vector<1x16x16xf32>
    %21 = arith.addf %19, %20 : vector<1x16x16xf32>
    %22 = vector.extract_strided_slice %18 {offsets = [0, 0, 6], sizes = [1, 16, 16], strides = [1, 1, 1]} : vector<1x16x22xf32> to vector<1x16x16xf32>
    %23 = arith.addf %21, %22 : vector<1x16x16xf32>
    %24 = vector.extract_strided_slice %18 {offsets = [0, 0, 0], sizes = [1, 16, 16], strides = [1, 1, 1]} : vector<1x16x22xf32> to vector<1x16x16xf32>
    %25 = vector.extract_strided_slice %18 {offsets = [0, 0, 1], sizes = [1, 16, 16], strides = [1, 1, 1]} : vector<1x16x22xf32> to vector<1x16x16xf32>
    %26 = arith.addf %24, %25 : vector<1x16x16xf32>
    %27 = vector.extract_strided_slice %18 {offsets = [0, 0, 2], sizes = [1, 16, 16], strides = [1, 1, 1]} : vector<1x16x22xf32> to vector<1x16x16xf32>
    %28 = arith.addf %26, %27 : vector<1x16x16xf32>
    %29 = arith.subf %23, %28 : vector<1x16x16xf32>
    %30 = vector.extract_strided_slice %5 {offsets = [0, 0, 0], sizes = [1, 22, 16], strides = [1, 1, 1]} : vector<1x22x22xf32> to vector<1x22x16xf32>
    %31 = vector.extract_strided_slice %5 {offsets = [0, 0, 1], sizes = [1, 22, 16], strides = [1, 1, 1]} : vector<1x22x22xf32> to vector<1x22x16xf32>
    %32 = arith.addf %30, %31 : vector<1x22x16xf32>
    %33 = vector.extract_strided_slice %5 {offsets = [0, 0, 2], sizes = [1, 22, 16], strides = [1, 1, 1]} : vector<1x22x22xf32> to vector<1x22x16xf32>
    %34 = arith.addf %32, %33 : vector<1x22x16xf32>
    %35 = vector.extract_strided_slice %5 {offsets = [0, 0, 3], sizes = [1, 22, 16], strides = [1, 1, 1]} : vector<1x22x22xf32> to vector<1x22x16xf32>
    %36 = arith.addf %34, %35 : vector<1x22x16xf32>
    %37 = vector.extract_strided_slice %5 {offsets = [0, 0, 4], sizes = [1, 22, 16], strides = [1, 1, 1]} : vector<1x22x22xf32> to vector<1x22x16xf32>
    %38 = arith.addf %36, %37 : vector<1x22x16xf32>
    %39 = vector.extract_strided_slice %5 {offsets = [0, 0, 5], sizes = [1, 22, 16], strides = [1, 1, 1]} : vector<1x22x22xf32> to vector<1x22x16xf32>
    %40 = arith.addf %38, %39 : vector<1x22x16xf32>
    %41 = vector.extract_strided_slice %5 {offsets = [0, 0, 6], sizes = [1, 22, 16], strides = [1, 1, 1]} : vector<1x22x22xf32> to vector<1x22x16xf32>
    %42 = arith.addf %40, %41 : vector<1x22x16xf32>
    %43 = vector.extract_strided_slice %42 {offsets = [0, 4, 0], sizes = [1, 16, 16], strides = [1, 1, 1]} : vector<1x22x16xf32> to vector<1x16x16xf32>
    %44 = vector.extract_strided_slice %42 {offsets = [0, 5, 0], sizes = [1, 16, 16], strides = [1, 1, 1]} : vector<1x22x16xf32> to vector<1x16x16xf32>
    %45 = arith.addf %43, %44 : vector<1x16x16xf32>
    %46 = vector.extract_strided_slice %42 {offsets = [0, 6, 0], sizes = [1, 16, 16], strides = [1, 1, 1]} : vector<1x22x16xf32> to vector<1x16x16xf32>
    %47 = arith.addf %45, %46 : vector<1x16x16xf32>
    %48 = vector.extract_strided_slice %42 {offsets = [0, 0, 0], sizes = [1, 16, 16], strides = [1, 1, 1]} : vector<1x22x16xf32> to vector<1x16x16xf32>
    %49 = vector.extract_strided_slice %42 {offsets = [0, 1, 0], sizes = [1, 16, 16], strides = [1, 1, 1]} : vector<1x22x16xf32> to vector<1x16x16xf32>
    %50 = arith.addf %48, %49 : vector<1x16x16xf32>
    %51 = vector.extract_strided_slice %42 {offsets = [0, 2, 0], sizes = [1, 16, 16], strides = [1, 1, 1]} : vector<1x22x16xf32> to vector<1x16x16xf32>
    %52 = arith.addf %50, %51 : vector<1x16x16xf32>
    %53 = arith.subf %47, %52 : vector<1x16x16xf32>
    %54 = arith.mulf %29, %29 : vector<1x16x16xf32>
    %55 = arith.mulf %53, %53 : vector<1x16x16xf32>
    %56 = arith.addf %54, %55 : vector<1x16x16xf32>
    %cst_10 = arith.constant 1.000000e-15 : f32
    %57 = vector.broadcast %cst_10 : f32 to vector<1x16x16xf32>
    %58 = arith.addf %56, %57 : vector<1x16x16xf32>
    %59 = math.sqrt %58 : vector<1x16x16xf32>
    %cst_11 = arith.constant 5.000000e-03 : f32
    %60 = vector.broadcast %cst_11 : f32 to vector<1x16x16xf32>
    %61 = arith.mulf %60, %59 : vector<1x16x16xf32>
    %cst_12 = arith.constant 1.000000e+00 : f32
    %62 = vector.broadcast %cst_12 : f32 to vector<1x16x16xf32>
    %63 = arith.addf %62, %61 : vector<1x16x16xf32>
    %64 = arith.mulf %1, %63 : vector<1x16x16xf32>
    %cst_13 = arith.constant 1.000000e+00 : f32
    %65 = vector.broadcast %cst_13 : f32 to vector<1x16x16xf32>
    %66 = arith.subf %65, %1 : vector<1x16x16xf32>
    %cst_14 = arith.constant 2.000000e-01 : f32
    %67 = vector.broadcast %cst_14 : f32 to vector<1x16x16xf32>
    %68 = arith.mulf %67, %59 : vector<1x16x16xf32>
    %cst_15 = arith.constant 1.000000e+00 : f32
    %69 = vector.broadcast %cst_15 : f32 to vector<1x16x16xf32>
    %70 = arith.addf %69, %68 : vector<1x16x16xf32>
    %71 = arith.mulf %66, %70 : vector<1x16x16xf32>
    %c0_16 = arith.constant 0 : index
    %c0_17 = arith.constant 0 : index
    %c0_18 = arith.constant 0 : index
    %c0_19 = arith.constant 0 : index
    %72 = vector.load %arg1[%c0_16, %c0_17, %c0_18, %c0_19] : memref<1x2x16x16xf32, #tpu.memory_space<vmem>>, vector<1x2x16x16xf32>
    %73 = vector.extract_strided_slice %72 {offsets = [0, 0, 0, 0], sizes = [1, 1, 16, 16], strides = [1, 1, 1, 1]} : vector<1x2x16x16xf32> to vector<1x1x16x16xf32>
    %74 = vector.shape_cast %73 : vector<1x1x16x16xf32> to vector<1x16x16xf32>
    %75 = vector.extract_strided_slice %72 {offsets = [0, 1, 0, 0], sizes = [1, 1, 16, 16], strides = [1, 1, 1, 1]} : vector<1x2x16x16xf32> to vector<1x1x16x16xf32>
    %76 = vector.shape_cast %75 : vector<1x1x16x16xf32> to vector<1x16x16xf32>
    %77 = arith.subf %74, %76 : vector<1x16x16xf32>
    %78 = arith.negf %77 : vector<1x16x16xf32>
    %79 = math.exp %78 : vector<1x16x16xf32>
    %cst_20 = arith.constant 1.000000e+00 : f32
    %80 = vector.broadcast %cst_20 : f32 to vector<1x16x16xf32>
    %81 = arith.addf %80, %79 : vector<1x16x16xf32>
    %82 = arith.divf %80, %81 : vector<1x16x16xf32>
    %cst_21 = arith.constant 1.000000e+00 : f32
    %83 = vector.broadcast %cst_21 : f32 to vector<1x16x16xf32>
    %84 = arith.subf %83, %82 : vector<1x16x16xf32>
    %85 = arith.mulf %82, %71 : vector<1x16x16xf32>
    %cst_22 = arith.constant dense<0.000000e+00> : vector<1x16xf32>
    %86 = vector.multi_reduction <add>, %85, %cst_22 [1] : vector<1x16x16xf32> to vector<1x16xf32>
    %87 = vector.shape_cast %86 : vector<1x16xf32> to vector<1x1x16xf32>
    %cst_23 = arith.constant dense<0.000000e+00> : vector<1x1xf32>
    %88 = vector.multi_reduction <add>, %87, %cst_23 [2] : vector<1x1x16xf32> to vector<1x1xf32>
    %89 = vector.shape_cast %88 : vector<1x1xf32> to vector<1x1x1xf32>
    %cst_24 = arith.constant dense<0.000000e+00> : vector<1x16xf32>
    %90 = vector.multi_reduction <add>, %71, %cst_24 [1] : vector<1x16x16xf32> to vector<1x16xf32>
    %91 = vector.shape_cast %90 : vector<1x16xf32> to vector<1x1x16xf32>
    %cst_25 = arith.constant dense<0.000000e+00> : vector<1x1xf32>
    %92 = vector.multi_reduction <add>, %91, %cst_25 [2] : vector<1x1x16xf32> to vector<1x1xf32>
    %93 = vector.shape_cast %92 : vector<1x1xf32> to vector<1x1x1xf32>
    %94 = arith.mulf %84, %64 : vector<1x16x16xf32>
    %cst_26 = arith.constant dense<0.000000e+00> : vector<1x16xf32>
    %95 = vector.multi_reduction <add>, %94, %cst_26 [1] : vector<1x16x16xf32> to vector<1x16xf32>
    %96 = vector.shape_cast %95 : vector<1x16xf32> to vector<1x1x16xf32>
    %cst_27 = arith.constant dense<0.000000e+00> : vector<1x1xf32>
    %97 = vector.multi_reduction <add>, %96, %cst_27 [2] : vector<1x1x16xf32> to vector<1x1xf32>
    %98 = vector.shape_cast %97 : vector<1x1xf32> to vector<1x1x1xf32>
    %cst_28 = arith.constant dense<0.000000e+00> : vector<1x16xf32>
    %99 = vector.multi_reduction <add>, %64, %cst_28 [1] : vector<1x16x16xf32> to vector<1x16xf32>
    %100 = vector.shape_cast %99 : vector<1x16xf32> to vector<1x1x16xf32>
    %cst_29 = arith.constant dense<0.000000e+00> : vector<1x1xf32>
    %101 = vector.multi_reduction <add>, %100, %cst_29 [2] : vector<1x1x16xf32> to vector<1x1xf32>
    %102 = vector.shape_cast %101 : vector<1x1xf32> to vector<1x1x1xf32>
    %103 = arith.mulf %82, %64 : vector<1x16x16xf32>
    %104 = arith.mulf %103, %103 : vector<1x16x16xf32>
    %105 = arith.mulf %84, %71 : vector<1x16x16xf32>
    %106 = arith.mulf %105, %105 : vector<1x16x16xf32>
    %107 = arith.addf %104, %106 : vector<1x16x16xf32>
    %cst_30 = arith.constant dense<0.000000e+00> : vector<1x16xf32>
    %108 = vector.multi_reduction <add>, %107, %cst_30 [1] : vector<1x16x16xf32> to vector<1x16xf32>
    %109 = vector.shape_cast %108 : vector<1x16xf32> to vector<1x1x16xf32>
    %cst_31 = arith.constant dense<0.000000e+00> : vector<1x1xf32>
    %110 = vector.multi_reduction <add>, %109, %cst_31 [2] : vector<1x1x16xf32> to vector<1x1xf32>
    %111 = vector.shape_cast %110 : vector<1x1xf32> to vector<1x1x1xf32>
    %cst_32 = arith.constant 1.000000e-15 : f32
    %112 = vector.broadcast %cst_32 : f32 to vector<1x1x1xf32>
    %113 = arith.addf %89, %112 : vector<1x1x1xf32>
    %114 = arith.divf %113, %93 : vector<1x1x1xf32>
    %cst_33 = arith.constant 1.000000e+00 : f32
    %115 = vector.broadcast %cst_33 : f32 to vector<1x1x1xf32>
    %116 = arith.subf %115, %114 : vector<1x1x1xf32>
    %117 = arith.mulf %116, %116 : vector<1x1x1xf32>
    %cst_34 = arith.constant 1.000000e-15 : f32
    %118 = vector.broadcast %cst_34 : f32 to vector<1x1x1xf32>
    %119 = arith.addf %98, %118 : vector<1x1x1xf32>
    %120 = arith.divf %119, %102 : vector<1x1x1xf32>
    %cst_35 = arith.constant 1.000000e+00 : f32
    %121 = vector.broadcast %cst_35 : f32 to vector<1x1x1xf32>
    %122 = arith.subf %121, %120 : vector<1x1x1xf32>
    %123 = arith.mulf %122, %122 : vector<1x1x1xf32>
    %124 = arith.addf %117, %123 : vector<1x1x1xf32>
    %cst_36 = arith.constant 5.000000e-01 : f32
    %125 = vector.broadcast %cst_36 : f32 to vector<1x1x1xf32>
    %126 = arith.mulf %124, %125 : vector<1x1x1xf32>
    %127 = arith.negf %126 : vector<1x1x1xf32>
    %128 = math.exp %127 : vector<1x1x1xf32>
    %cst_37 = arith.constant 1.000000e+00 : f32
    %129 = vector.broadcast %cst_37 : f32 to vector<1x1x1xf32>
    %130 = arith.addf %129, %128 : vector<1x1x1xf32>
    %131 = arith.divf %129, %130 : vector<1x1x1xf32>
    %cst_38 = arith.constant 5.000000e-01 : f32
    %132 = vector.broadcast %cst_38 : f32 to vector<1x1x1xf32>
    %133 = arith.mulf %111, %132 : vector<1x1x1xf32>
    %cst_39 = arith.constant 1.000000e+00 : f32
    %134 = vector.broadcast %cst_39 : f32 to vector<1x1x1xf32>
    %135 = arith.addf %133, %134 : vector<1x1x1xf32>
    %136 = math.log %135 : vector<1x1x1xf32>
    %cst_40 = arith.constant 1.000000e+00 : f32
    %137 = vector.broadcast %cst_40 : f32 to vector<1x1x1xf32>
    %138 = arith.addf %136, %137 : vector<1x1x1xf32>
    %139 = math.log %138 : vector<1x1x1xf32>
    %cst_41 = arith.constant 1.000000e+00 : f32
    %140 = vector.broadcast %cst_41 : f32 to vector<1x1x1xf32>
    %141 = arith.addf %139, %140 : vector<1x1x1xf32>
    %142 = arith.negf %141 : vector<1x1x1xf32>
    %143 = math.exp %142 : vector<1x1x1xf32>
    %cst_42 = arith.constant 1.000000e+00 : f32
    %144 = vector.broadcast %cst_42 : f32 to vector<1x1x1xf32>
    %145 = arith.addf %144, %143 : vector<1x1x1xf32>
    %146 = arith.divf %144, %145 : vector<1x1x1xf32>
    %147 = tpu.iota {dimensions = array<i32: 2>} : vector<1x8x128xi32>
    %c0_i32 = arith.constant 0 : i32
    %148 = vector.broadcast %c0_i32 : i32 to vector<1x8x128xi32>
    %149 = arith.cmpi eq, %147, %148 : vector<1x8x128xi32>
    %150 = vector.shape_cast %131 : vector<1x1x1xf32> to vector<1x1x1xf32>
    %151 = vector.broadcast %150 : vector<1x1x1xf32> to vector<1x8x128xf32>
    %152 = vector.shape_cast %146 : vector<1x1x1xf32> to vector<1x1x1xf32>
    %153 = vector.broadcast %152 : vector<1x1x1xf32> to vector<1x8x128xf32>
    %154 = arith.select %149, %151, %153 : vector<1x8x128xi1>, vector<1x8x128xf32>
    %c0_43 = arith.constant 0 : index
    %c0_44 = arith.constant 0 : index
    %c0_45 = arith.constant 0 : index
    %155 = vector.load %arg3[%c0_43, %c0_44, %c0_45] : memref<1x8x128xf32, #tpu.memory_space<vmem>>, vector<1x8x128xf32>
    tpu.vector_store %arg3[%c0_43, %c0_44, %c0_45], %154 {strides = array<i32>} : memref<1x8x128xf32, #tpu.memory_space<vmem>>, vector<1x8x128xf32>,
    return
  }
  func.func @transform_0(%arg0: i32) -> (i32, i32, i32, i32) {
    %c0_i32 = arith.constant 0 : i32
    %c0_i32_0 = arith.constant 0 : i32
    %c0_i32_1 = arith.constant 0 : i32
    %c0_i32_2 = arith.constant 0 : i32
    return %arg0, %c0_i32, %c0_i32_0, %c0_i32_1 : i32, i32, i32, i32
  }
  func.func @transform_1(%arg0: i32) -> (i32, i32, i32) {
    %c0_i32 = arith.constant 0 : i32
    %c0_i32_0 = arith.constant 0 : i32
    %c0_i32_1 = arith.constant 0 : i32
    return %arg0, %c0_i32, %c0_i32_0 : i32, i32, i32
  }
  func.func @transform_2(%arg0: i32) -> (i32, i32, i32) {
    %c0_i32 = arith.constant 0 : i32
    %c0_i32_0 = arith.constant 0 : i32
    %c0_i32_1 = arith.constant 0 : i32
    return %arg0, %c0_i32, %c0_i32_0 : i32, i32, i32
  }
}

</mosaic_0001>

<bundles_post_ra>
// kernel: tpu_custom_call.1
= control target key start
LH: loop header
LB: loop body
LE: loop exit
PB: predicated region body
PF: predicated region fallthrough
CT: control target
= control target key end

     0   :  { %7 = vsyncpa [#allocation4], 0  ;;  %s1324_s0 = inlined_call_operand.hbm [shape: f32[2,2,16,16], index: 0, kind: input, shape index: {}]   ;;  %s1325_s1 = inlined_call_operand.hbm [shape: bf16[2,16,16], index: 1, kind: input, shape index: {}]   ;;  %s1326_s2 = inlined_call_operand.hbm [shape: f32[2,8,128], index: 2, kind: output, shape index: {}]  }
   0x1   :  { %9 = vsyncpa [#allocation4 + $0x1], 0 }
   0x2   :  { %10 = vsyncpa [#allocation7], 0 }
   0x3   :  { %12 = vsyncpa [#allocation7 + $0x1], 0 }
   0x4   :  { %13 = vsyncpa [#allocation5], 0 }
   0x5   :  { %15 = vsyncpa [#allocation5 + $0x1], 0  ;;  %s1011_s9 = smov 0   ;;  %s1013_s10 = smov 0  }
   0x6   :  { %s1015_s11 = smov 0   ;;  %s1017_s12 = smov 0  }
   0x7 LB: > { %s1032_s13 = sadd.s32 4294967295, %s978_s12   ;;  %s730_s14 = sadd.s32 4294967294, %s978_s12   ;;  %s978_s12 = sphi %s1017_s12, %s1342_s12   ;;  %s974_s11 = sphi %s1015_s11, %s1341_s11   ;;  %s970_s10 = sphi %s1013_s10, %s1340_s10   ;;  %s966_s9 = sphi %s1011_s9, %s1339_s9  }
   0x8   : > { %s1036_s15 = sadd.s32 1, %s978_s12   ;;  %s28_s16 = sadd.s32 1, %s974_s11 }
   0x9   : > { %s25_s17 = ssub.s32 %s978_s12, %s1036_s15  ;;  %p35_p0 = scmp.ne.s32.totalorder %s974_s11, %s970_s10 }
   0xa   : > { %p26_p1 = scmp.eq.s32.totalorder %s25_s17, 0  ;;  %p36_p2 = scmp.eq.s32.totalorder %s978_s12, 0 }
   0xb   : > { %p41_p3 = scmp.ne.s32.totalorder %s970_s10, %s966_s9  ;;  %p42_p4 = scmp.eq.s32.totalorder %s1032_s13, 0 }
   0xc   : > { %s1048_s18 = scalar_select %p26_p1, %s974_s11, %s28_s16  }
   0xd   : > { %p1050_p5 = por %p36_p2, %p35_p0  ;;  %p1054_p6 = por %p42_p4, %p41_p3 }
   0xe   : > { %p91_p7 = scmp.eq.s32.totalorder %s1032_s13, 1  ;;  %p97_p8 = scmp.eq.s32.totalorder %s730_s14, 1 }
   0xf   : > { %s1330_s20 = scalar_select %p1054_p6, 1, 0 }
  0x10   : > { %p774_p10 = scmp.lt.s32.totalorder %s978_s12, 2  ;;  %p1061_p11 = por %p91_p7, %p35_p0 }
  0x11   : > { %p1065_p12 = por %p97_p8, %p41_p3  ;;  %s1070_s23 = sand.u32 1, %s974_s11  }
  0x12   : > { %s1331_s21 = scalar_select %p1061_p11, 1, 0 }
  0x13   : > { %s1332_s22 = scalar_select %p1065_p12, 1, 0 }
  0x14   : > { %s751_s24 = sshll.u32 %s978_s12, 9  ;;  %s733_s25 = sshll.u32 %s1070_s23, 5 }
  0x15   : > { %s1077_s28 = scalar_lea.hbm %s1324_s0, %s751_s24  ;;  %s121_s29 = scalar_lea.vmem [#allocation3], %s733_s25 }
  0x16   : > { %s128_s30 = sshll.u32 %s121_s29, 4  ;;  %p1081_p13 = pnand %p774_p10, %p1050_p5  ;;  %s1085_s30 = int_to_ptr.vmem [resolvable:$true] %s128_s30 }
  0x17   : > { %s118_s4 = scalar_lea.sflag [#allocation4], %s1070_s23  ;;  %s854_s5 = scalar_lea.hbm %s1077_s28, 512 }
  0x18   : > { %p855_p0 = scmp.ne.s32.totalorder %s1077_s28, %s854_s5  ;;  %p856_p1 = pneg %p1081_p13 }
  0x19   : > { %s859_s8 = scalar_lea.hbm %s1324_s0, 1024  ;;  %p860_p4 = scmp.lt.s32.totalorder %s1077_s28, %s1324_s0 }
  0x1a   : > { %p857_p2 = pnand %p856_p1, %p855_p0  ;;  %p861_p5 = scmp.lt.s32.totalorder %s859_s8, %s854_s5 }
  0x1c   : > { %p858_p3 = pneg %p857_p2  ;;  %p862_p7 = por %p861_p5, %p860_p4 }
  0x1e   : > { %p863_p8 = pnand %p862_p7, %p858_p3 }
  0x20   : > { %866 = shalt.err (!%p863_p8)
}
  0x21   : > { %s867_s17 = scalar_lea.vmem %s1085_s30, 512  ;;  %s980_s19 = smov [#allocation3]  }
  0x22   : > { %p868_p10 = scmp.ne.s32.totalorder %s1085_s30, %s867_s17  ;;  %s872_s24 = sshll.u32 %s980_s19, 4  ;;  %s873_s24 = int_to_ptr.vmem [resolvable:$false] %s872_s24 }
  0x23   : > { %s874_s25 = scalar_lea.vmem %s873_s24, 1024  ;;  %p875_p9 = scmp.lt.s32.totalorder %s1085_s30, %s873_s24 }
  0x24   : > { %p870_p0 = pnand %p868_p10, %p856_p1  ;;  %p876_p12 = scmp.lt.s32.totalorder %s874_s25, %s867_s17 }
  0x26   : > { %p871_p2 = pneg %p870_p0  ;;  %p877_p11 = por %p876_p12, %p875_p9 }
  0x28   : > { %p878_p4 = pnand %p877_p11, %p871_p2 }
  0x2a   : > { %881 = shalt.err (!%p878_p4)
}
  0x2b   : > { %s981_s26 = smov 128   ;;  %s982_s27 = smov 8  }
  0x2c   : > { %766 = dma.hbm_to_vmem [thread:$0]  (!%p1081_p13), %s1077_s28, 512, %s1085_s30, %s118_s4, %s981_s26, %s981_s26, %s982_s27  }
  0x2d   : > { %p739_p3 = scmp.ge.s32.totalorder %s978_s12, 1  ;;  %p157_p5 = scmp.lt.s32.totalorder %s978_s12, 3 }
  0x2e   : > { %s736_s29 = sshll.u32 %s1070_s23, 3  ;;  %s752_s6 = sshll.u32 %s978_s12, 7 }
  0x2f   : > { %p1117_p9 = pnand %p739_p3, %p157_p5  ;;  %s142_s7 = scalar_lea.vmem [#allocation6], %s736_s29 }
  0x30   : > { %s149_s8 = sshll.u32 %s142_s7, 4  ;;  %s1125_s17 = scalar_lea.hbm %s1325_s1, %s752_s6  ;;  %s1127_s8 = int_to_ptr.vmem [resolvable:$true] %s149_s8 }
  0x31   : > { %s139_s28 = scalar_lea.sflag [#allocation7], %s1070_s23  ;;  %s882_s30 = scalar_lea.hbm %s1125_s17, 128 }
  0x32   : > { %p883_p11 = scmp.ne.s32.totalorder %s1125_s17, %s882_s30  ;;  %s887_s24 = scalar_lea.hbm %s1325_s1, 256 }
  0x33   : > { %p888_p8 = scmp.lt.s32.totalorder %s1125_s17, %s1325_s1  ;;  %p889_p10 = scmp.lt.s32.totalorder %s887_s24, %s882_s30 }
  0x34   : > { %p885_p12 = pnand %p883_p11, %p856_p1 }
  0x35   : > { %p890_p0 = por %p889_p10, %p888_p8 }
  0x36   : > { %p886_p7 = pneg %p885_p12 }
  0x38   : > { %p891_p2 = pnand %p890_p0, %p886_p7 }
  0x3a   : > { %894 = shalt.err (!%p891_p2)
}
  0x3b   : > { %s895_s27 = scalar_lea.vmem %s1127_s8, 128  ;;  %s983_s29 = smov [#allocation6]  }
  0x3c   : > { %p896_p4 = scmp.ne.s32.totalorder %s1127_s8, %s895_s27  ;;  %s900_s6 = sshll.u32 %s983_s29, 4  ;;  %s901_s6 = int_to_ptr.vmem [resolvable:$false] %s900_s6 }
  0x3d   : > { %s902_s7 = scalar_lea.vmem %s901_s6, 256  ;;  %p903_p11 = scmp.lt.s32.totalorder %s1127_s8, %s901_s6 }
  0x3e   : > { %p898_p3 = pnand %p896_p4, %p856_p1  ;;  %p904_p12 = scmp.lt.s32.totalorder %s902_s7, %s895_s27 }
  0x40   : > { %p899_p5 = pneg %p898_p3  ;;  %p905_p6 = por %p904_p12, %p903_p11 }
  0x42   : > { %p906_p8 = pnand %p905_p6, %p899_p5 }
  0x44   : > { %909 = shalt.err (!%p906_p8)
}
  0x45   : > { %s984_s14 = smov 64   ;;  %s985_s16 = smov 4  }
  0x46   : > { %769 = dma.hbm_to_vmem [thread:$0]  (!%p1081_p13), %s1125_s17, 128, %s1127_s8, %s139_s28, %s984_s14, %s984_s14, %s985_s16  }
  0x47   : > { %161 = sbr.rel (%p1117_p9) target bundleno = 885 (0x375), region = 28  ;;  %s1157_s30 = sand.u32 (!%p1117_p9), 1, %s970_s10  }
  0x48   : > { %s740_s4 = sshll.u32 (!%p1117_p9), %s1157_s30, 5  ;;  %s164_s19 = scalar_lea.sflag (!%p1117_p9), [#allocation4], %s1157_s30 }
  0x49   : > { %s1161_s24 = scalar_lea.vmem (!%p1117_p9), [#allocation3], %s740_s4  ;;  %p1335_p6 = scmp.ne.s32.totalorder (!%p1117_p9), %s1330_s20, 0 }
  0x4c   : > { %953 = dma.done.wait (%p1335_p6), %s164_s19, 512  }
  0x4d   : > { %955 = vsyncadd (%p1335_p6), %s164_s19, 4294966784  ;;  %s741_s23 = sshll.u32 %s1157_s30, 3  ;;  %s173_s3 = scalar_lea.sflag [#allocation7], %s1157_s30 }
  0x4e   : > { %s176_s5 = scalar_lea.vmem [#allocation6], %s741_s23 }
  0x4f   : > { %957 = dma.done.wait (%p1335_p6), %s173_s3, 128  }
  0x50   : > { %959 = vsyncadd (%p1335_p6), %s173_s3, 4294967168  ;;  %vm206_vm0 = vcmask 179200   ;;  %vm209_vm1 = vcmask 177152   ;;  %v986_v0 = vmov 0.0   ;;  %v754_v1 = vld [vmem:[%s176_s5] sm:$0xff]   ;;  %s987_s8 = smov 3  }
  0x51   : > { %207 = vst.msk [vmem:[#allocation2] sm:$0xff] %vm206_vm0, %v986_v0  ;;  %208 = vst.msk [vmem:[#allocation2 + $0x8] sm:$0xff] %vm206_vm0, %v986_v0  ;;  %v1175_v2 = vunpack.c.l.bf16 %v754_v1  ;;  %v1177_v3 = vunpack.c.h.bf16 %v754_v1  ;;  %vm219_vm2 = vcmask 154648   ;;  %s988_s20 = smov 127   ;;  %s989_s17 = smov 126   ;;  %vm228_vm3 = vcmask 1046528  }
  0x52   : > { %210 = vst.msk [vmem:[#allocation2 + $0x10] sm:$0x3f] %vm209_vm1, %v986_v0  ;;  %s990_s28 = smov 125   ;;  %vm238_vm4 = vcmask 1045504   ;;  %s991_s25 = smov 124   ;;  %vm248_vm5 = vcmask 1044480  }
  0x53   : > { %v821_v4 = vpack.i.bf16 %v1177_v3, %v1175_v2  ;;  %vm258_vm6 = vcmask 1043456   ;;  %s992_s26 = smov 123   ;;  %vm268_vm7 = vcmask 1042432   ;;  %s993_s27 = smov 122   ;;  %vm278_vm8 = vcmask 1041408  }
  0x54   : > { %s994_s29 = smov 4   ;;  %vm513_vm13 = vcmask 130048   ;;  %s748_s6 = sshll.u32 %s1032_s13, 7 }
  0x55   : > { %822 = vrot.lane.b32.xlu0 %v821_v4, %s987_s8  ;;  %s201_s7 = scalar_lea.vmem [#allocation8], %s741_s23  ;;  %s1287_s19 = scalar_lea.hbm %s1326_s2, %s748_s6 }
  0x56   : > { %s637_s14 = sshll.u32 %s201_s7, 4  ;;  %p1336_p1 = scmp.ne.s32.totalorder %s1331_s21, 0  ;;  %s638_s14 = int_to_ptr.vmem [resolvable:$true] %s637_s14 }
  0x57   : > { %s910_s3 = scalar_lea.vmem %s638_s14, 128  ;;  %s995_s13 = smov [#allocation8]  }
  0x58   : > { %p911_p13 = scmp.ne.s32.totalorder %s638_s14, %s910_s3  ;;  %s914_s23 = sshll.u32 %s995_s13, 4  ;;  %s915_s23 = int_to_ptr.vmem [resolvable:$false] %s914_s23 }
  0x59   : > { %s916_s5 = scalar_lea.vmem %s915_s23, 256  ;;  %p917_p10 = scmp.lt.s32.totalorder %s638_s14, %s915_s23 }
  0x5a   : > { %p912_p9 = pnand %p911_p13, %p1336_p1  ;;  %p918_p0 = scmp.lt.s32.totalorder %s916_s5, %s910_s3 }
  0x5c   : > { %p913_p7 = pneg %p912_p9  ;;  %p919_p2 = por %p918_p0, %p917_p10 }
  0x5e   : > { %p920_p4 = pnand %p919_p2, %p913_p7 }
  0xc7   : > { %v823_v5 = vpop.permute.xlu0 %822 }
  0xc8   : > { %v825_v6 = vunpack.i.h.bf16 %v823_v5  ;;  %v824_v7 = vunpack.i.l.bf16 %v823_v5 }
  0xca   : > { %221 = vst.msk [vmem:[#allocation2 + $0xb] sm:$0xff] %vm219_vm2, %v825_v6  ;;  %220 = vst.msk [vmem:[#allocation2 + $0x3] sm:$0xff] %vm219_vm2, %v824_v7 }
  0xd1   : > { %v1181_v8 = vld [vmem:[#allocation2] sm:$0xff]  ;;  %v1183_v9 = vld [vmem:[#allocation2 + $0x8] sm:$0xff]  ;;  %v1189_v10 = vld [vmem:[#allocation2 + $0x10] sm:$0x3f] }
  0xd2   : > { %318 = vrot.lane.b32.xlu1 %v1183_v9, %s988_s20  ;;  %316 = vrot.lane.b32.xlu0 %v1181_v8, %s988_s20  ;;  %v230_v11 = vrot.slane %v1183_v9, 1  ;;  %v232_v12 = vrot.slane %v1189_v10, 1  ;;  %v229_v13 = vrot.slane %v1181_v8, 1  ;;  %v240_v16 = vrot.slane %v1183_v9, 2 }
  0xd3   : > { %v242_v17 = vrot.slane %v1189_v10, 2  ;;  %v239_v18 = vrot.slane %v1181_v8, 2  ;;  %v250_v21 = vrot.slane %v1183_v9, 3  ;;  %v252_v23 = vrot.slane %v1189_v10, 3 }
  0xd4   : > { %v233_v14 = vsel %vm228_vm3, %v230_v11, %v232_v12  ;;  %v231_v15 = vsel %vm228_vm3, %v229_v13, %v230_v11  ;;  %v249_v25 = vrot.slane %v1181_v8, 3  ;;  %v260_v28 = vrot.slane %v1183_v9, 4 }
  0xd5   : > { %v237_v19 = vadd.f32 %v233_v14, %v1183_v9  ;;  %v236_v20 = vadd.f32 %v231_v15, %v1181_v8  ;;  %v243_v22 = vsel %vm238_vm4, %v240_v16, %v242_v17  ;;  %v241_v24 = vsel %vm238_vm4, %v239_v18, %v240_v16 }
  0xd6   : > { %320 = vrot.lane.b32.xlu1 %v1189_v10, %s988_s20  ;;  %328 = vrot.lane.b32.xlu0 %v1181_v8, %s989_s17  ;;  %v253_v29 = vsel %vm248_vm5, %v250_v21, %v252_v23  ;;  %v262_v30 = vrot.slane %v1189_v10, 4  ;;  %v251_v31 = vsel %vm248_vm5, %v249_v25, %v250_v21  ;;  %v259_v32 = vrot.slane %v1181_v8, 4 }
  0xd7   : > { %v247_v26 = vadd.f32 %v243_v22, %v237_v19  ;;  %v246_v27 = vadd.f32 %v241_v24, %v236_v20  ;;  %v270_v35 = vrot.slane %v1183_v9, 5  ;;  %v272_v37 = vrot.slane %v1189_v10, 5 }
  0xd8   : > { %v263_v36 = vsel %vm258_vm6, %v260_v28, %v262_v30  ;;  %v261_v38 = vsel %vm258_vm6, %v259_v32, %v260_v28  ;;  %v269_v39 = vrot.slane %v1181_v8, 5  ;;  %v280_v42 = vrot.slane %v1183_v9, 6 }
  0xd9   : > { %v257_v33 = vadd.f32 %v253_v29, %v247_v26  ;;  %v256_v34 = vadd.f32 %v251_v31, %v246_v27  ;;  %v273_v43 = vsel %vm268_vm7, %v270_v35, %v272_v37  ;;  %v282_v44 = vrot.slane %v1189_v10, 6 }
  0xda   : > { %330 = vrot.lane.b32.xlu1 %v1183_v9, %s989_s17  ;;  %332 = vrot.lane.b32.xlu0 %v1189_v10, %s989_s17  ;;  %v271_v45 = vsel %vm268_vm7, %v269_v39, %v270_v35  ;;  %v279_v46 = vrot.slane %v1181_v8, 6 }
  0xdb   : > { %v267_v40 = vadd.f32 %v263_v36, %v257_v33  ;;  %v266_v41 = vadd.f32 %v261_v38, %v256_v34  ;;  %v283_v49 = vsel %vm278_vm8, %v280_v42, %v282_v44 }
  0xdc   : > { %v281_v50 = vsel %vm278_vm8, %v279_v46, %v280_v42 }
  0xdd   : > { %v277_v47 = vadd.f32 %v273_v43, %v267_v40  ;;  %v276_v48 = vadd.f32 %v271_v45, %v266_v41 }
  0xde   : > { %340 = vrot.lane.b32.xlu1 %v1181_v8, %s990_s28  ;;  %342 = vrot.lane.b32.xlu0 %v1183_v9, %s990_s28 }
  0xdf   : > { %v287_v51 = vadd.f32 %v283_v49, %v277_v47  ;;  %v286_v52 = vadd.f32 %v281_v50, %v276_v48 }
  0xe2   : > { %344 = vrot.lane.b32.xlu1 %v1189_v10, %s990_s28  ;;  %352 = vrot.lane.b32.xlu0 %v1181_v8, %s991_s25 }
  0xe6   : > { %354 = vrot.lane.b32.xlu1 %v1183_v9, %s991_s25  ;;  %356 = vrot.lane.b32.xlu0 %v1189_v10, %s991_s25 }
  0xea   : > { %364 = vrot.lane.b32.xlu1 %v1181_v8, %s992_s26  ;;  %366 = vrot.lane.b32.xlu0 %v1183_v9, %s992_s26 }
  0xee   : > { %368 = vrot.lane.b32.xlu1 %v1189_v10, %s992_s26  ;;  %376 = vrot.lane.b32.xlu0 %v1181_v8, %s993_s27 }
  0xf2   : > { %378 = vrot.lane.b32.xlu1 %v1183_v9, %s993_s27  ;;  %380 = vrot.lane.b32.xlu0 %v1189_v10, %s993_s27 }
  0xf6   : > { %292 = vrot.lane.b32.xlu0 %v287_v51, %s988_s20  ;;  %290 = vrot.lane.b32.xlu1 %v286_v52, %s988_s20 }
  0xfa   : > { %300 = vrot.lane.b32.xlu0 %v287_v51, %s989_s17  ;;  %298 = vrot.lane.b32.xlu1 %v286_v52, %s989_s17 }
 0x144   : > { %v319_v53 = vpop.permute.xlu1 %318  ;;  %v317_v54 = vpop.permute.xlu0 %316 }
 0x145   : > { %v325_v63 = vadd.f32 %v317_v54, %v1181_v8  ;;  %v326_v5 = vadd.f32 %v319_v53, %v1183_v9 }
 0x148   : > { %v321_v55 = vpop.permute.xlu1 %320  ;;  %v329_v56 = vpop.permute.xlu0 %328 }
 0x149   : > { %v337_v4 = vadd.f32 %v329_v56, %v325_v63  ;;  %v327_v6 = vadd.f32 %v321_v55, %v1189_v10 }
 0x14c   : > { %v331_v57 = vpop.permute.xlu1 %330  ;;  %v333_v58 = vpop.permute.xlu0 %332 }
 0x14d   : > { %v338_v13 = vadd.f32 %v331_v57, %v326_v5  ;;  %v339_v14 = vadd.f32 %v333_v58, %v327_v6 }
 0x150   : > { %v341_v59 = vpop.permute.xlu1 %340  ;;  %v343_v60 = vpop.permute.xlu0 %342 }
 0x151   : > { %v349_v7 = vadd.f32 %v341_v59, %v337_v4  ;;  %v350_v16 = vadd.f32 %v343_v60, %v338_v13 }
 0x154   : > { %v345_v61 = vpop.permute.xlu1 %344  ;;  %v353_v62 = vpop.permute.xlu0 %352 }
 0x155   : > { %v361_v15 = vadd.f32 %v353_v62, %v349_v7  ;;  %v351_v17 = vadd.f32 %v345_v61, %v339_v14 }
 0x158   : > { %v355_v0 = vpop.permute.xlu1 %354  ;;  %v357_v1 = vpop.permute.xlu0 %356 }
 0x159   : > { %v362_v21 = vadd.f32 %v355_v0, %v350_v16  ;;  %v363_v8 = vadd.f32 %v357_v1, %v351_v17 }
 0x15c   : > { %v365_v11 = vpop.permute.xlu1 %364  ;;  %v367_v12 = vpop.permute.xlu0 %366 }
 0x15d   : > { %v373_v18 = vadd.f32 %v365_v11, %v361_v15  ;;  %v374_v23 = vadd.f32 %v367_v12, %v362_v21 }
 0x160   : > { %v369_v19 = vpop.permute.xlu1 %368  ;;  %v377_v20 = vpop.permute.xlu0 %376 }
 0x161   : > { %v385_v22 = vadd.f32 %v377_v20, %v373_v18  ;;  %v375_v24 = vadd.f32 %v369_v19, %v363_v8 }
 0x163   : > { %v391_v27 = vrot.slane %v385_v22, 1  ;;  %v402_v34 = vrot.slane %v385_v22, 2 }
 0x164   : > { %v379_v25 = vpop.permute.xlu1 %378  ;;  %v381_v9 = vpop.permute.xlu0 %380 }
 0x165   : > { %v386_v26 = vadd.f32 %v379_v25, %v374_v23  ;;  %v387_v10 = vadd.f32 %v381_v9, %v375_v24 }
 0x167   : > { %v392_v28 = vrot.slane %v386_v26, 1  ;;  %v403_v29 = vrot.slane %v386_v26, 2  ;;  %v394_v30 = vrot.slane %v387_v10, 1  ;;  %v405_v31 = vrot.slane %v387_v10, 2 }
 0x168   : > { %v293_v32 = vpop.permute.xlu0 %292  ;;  %v291_v33 = vpop.permute.xlu1 %290 }
 0x169   : > { %v393_v35 = vsel %vm228_vm3, %v391_v27, %v392_v28  ;;  %v395_v36 = vsel %vm228_vm3, %v392_v28, %v394_v30  ;;  %v401_v39 = vadd.f32 %v394_v30, %v387_v10  ;;  %v404_v40 = vsel %vm238_vm4, %v402_v34, %v403_v29  ;;  %v494_v34 = vld [vmem:[%s1161_s24 + $0x18] sm:$0xff] }
 0x16a   : > { %v399_v37 = vadd.f32 %v393_v35, %v385_v22  ;;  %v400_v38 = vadd.f32 %v395_v36, %v386_v26  ;;  %v406_v41 = vsel %vm238_vm4, %v403_v29, %v405_v31  ;;  %v297_v42 = vadd.f32 %v293_v32, %v287_v51  ;;  %v491_v35 = vld [vmem:[%s1161_s24] sm:$0xff]  ;;  %v493_v36 = vld [vmem:[%s1161_s24 + $0x10] sm:$0xff] }
 0x16b   : > { %v296_v43 = vadd.f32 %v291_v33, %v286_v52  ;;  %v412_v53 = vadd.f32 %v405_v31, %v401_v39  ;;  %v492_v33 = vld [vmem:[%s1161_s24 + $0x8] sm:$0xff]  ;;  %s624_s24 = scalar_lea.sflag [#allocation5], %s1157_s30 }
 0x16c   : > { %v410_v44 = vadd.f32 %v404_v40, %v399_v37  ;;  %v301_v45 = vpop.permute.xlu0 %300  ;;  %v299_v46 = vpop.permute.xlu1 %298  ;;  %v411_v47 = vadd.f32 %v406_v41, %v400_v38  ;;  %v496_v37 = vsub.f32 %v492_v33, %v494_v34  ;;  %v495_v38 = vsub.f32 %v491_v35, %v493_v36 }
 0x16d   : > { %v305_v48 = vadd.f32 %v301_v45, %v297_v42  ;;  %v304_v49 = vadd.f32 %v299_v46, %v296_v43 }
 0x16e   : > { %v415_v50 = vrot.slane %v410_v44, 4  ;;  %v416_v54 = vrot.slane %v411_v47, 4  ;;  %v744_v39 = vmul.f32 -1.442695, %v496_v37  ;;  %v743_v40 = vmul.f32 -1.442695, %v495_v38 }
 0x16f   : > { %310 = vrot.lane.b32.xlu0 %v305_v48, %s994_s29  ;;  %308 = vrot.lane.b32.xlu1 %v304_v49, %s994_s29 }
 0x170   : > { %v417_v55 = vsel %vm258_vm6, %v415_v50, %v416_v54  ;;  %v423_v56 = vsub.f32 %v412_v53, %v416_v54  ;;  %v421_v57 = vsub.f32 %v410_v44, %v415_v50  ;;  %v476_v54 = vsub.f32 1.0, %v1177_v3 }
 0x171   : > { %v422_v58 = vsub.f32 %v411_v47, %v417_v55 }
 0x172   : > { %v428_v59 = vmul.f32 %v423_v56, %v423_v56  ;;  %v426_v51 = vmul.f32 %v421_v57, %v421_v57  ;;  %v475_v56 = vsub.f32 1.0, %v1175_v2 }
 0x173   : > { %v427_v52 = vmul.f32 %v422_v58, %v422_v58 }
 0x174   : > { %v435_v60 = vrot.slane %v428_v59, 4  ;;  %v432_v61 = vrot.slane %v426_v51, 4 }
 0x175   : > { %v433_v62 = vrot.slane %v427_v52, 4 }
 0x177   : > { %v436_v63 = vsel %vm258_vm6, %v433_v62, %v435_v60  ;;  %v434_v0 = vsel %vm258_vm6, %v432_v61, %v433_v62 }
 0x178   : > { %439 = vrot.lane.b32.xlu0 %v436_v63, %s994_s29  ;;  %437 = vrot.lane.b32.xlu1 %v434_v0, %s994_s29 }
 0x1e1   : > { %v311_v1 = vpop.permute.xlu0 %310  ;;  %v309_v4 = vpop.permute.xlu1 %308 }
 0x1e2   : > { %v315_v5 = vsub.f32 %v305_v48, %v311_v1  ;;  %v314_v6 = vsub.f32 %v304_v49, %v309_v4 }
 0x1e4   : > { %v425_v7 = vmul.f32 %v315_v5, %v315_v5  ;;  %v424_v11 = vmul.f32 %v314_v6, %v314_v6 }
 0x1ea   : > { %v440_v12 = vpop.permute.xlu0 %439  ;;  %v438_v13 = vpop.permute.xlu1 %437 }
 0x1eb   : > { %v444_v14 = vadd.f32 %v440_v12, %v425_v7  ;;  %v443_v15 = vadd.f32 %v438_v13, %v424_v11 }
 0x1ed   : > { %v446_v16 = vadd.f32 1e-15, %v444_v14  ;;  %v445_v17 = vadd.f32 1e-15, %v443_v15 }
 0x1ef   : > { %826 = vrsqrt.f32 %v446_v16  ;;  %vm456_vm9 = vcmp.eq.f32.partialorder %v446_v16, inf  ;;  %v459_v21 = vand.u32 2147483648, %v446_v16  ;;  %vm458_vm10 = vcmp.eq.f32.partialorder %v446_v16, 0.0 }
 0x1f0   : > { %828 = vrsqrt.f32 %v445_v17  ;;  %vm449_vm11 = vcmp.eq.f32.partialorder %v445_v17, inf  ;;  %v452_v23 = vand.u32 2147483648, %v445_v17  ;;  %vm451_vm12 = vcmp.eq.f32.partialorder %v445_v17, 0.0 }
 0x1f1   : > { %830 = vpow2.f32 %v744_v39 }
 0x1f2   : > { %832 = vpow2.f32 %v743_v40 }
 0x1fc   : > { %v827_v18 = vpop.eup %826 }
 0x1fd   : > { %v829_v19 = vpop.eup %828  ;;  %v455_v20 = vmul.f32 %v827_v18, %v446_v16 }
 0x1fe   : > { %v448_v8 = vmul.f32 %v829_v19, %v445_v17  ;;  %v831_v41 = vpop.eup %830 }
 0x1ff   : > { %v457_v22 = vsel %vm456_vm9, %v446_v16, %v455_v20  ;;  %v833_v42 = vpop.eup %832  ;;  %v504_v43 = vadd.f32 1.0, %v831_v41 }
 0x200   : > { %v460_v24 = vsel %vm458_vm10, %v459_v21, %v457_v22  ;;  %v450_v25 = vsel %vm449_vm11, %v445_v17, %v448_v8  ;;  %v503_v44 = vadd.f32 1.0, %v833_v42 }
 0x201   : > { %v462_v9 = vmul.f32 0.005, %v460_v24  ;;  %v453_v26 = vsel %vm451_vm12, %v452_v23, %v450_v25  ;;  %v478_v28 = vmul.f32 0.2, %v460_v24  ;;  %834 = vrcp.f32 %v504_v43 }
 0x202   : > { %v461_v10 = vmul.f32 0.005, %v453_v26  ;;  %v477_v30 = vmul.f32 0.2, %v453_v26  ;;  %836 = vrcp.f32 %v503_v44 }
 0x203   : > { %v464_v27 = vadd.f32 1.0, %v462_v9  ;;  %v480_v31 = vadd.f32 1.0, %v478_v28 }
 0x204   : > { %v463_v29 = vadd.f32 1.0, %v461_v10  ;;  %v479_v32 = vadd.f32 1.0, %v477_v30 }
 0x205   : > { %469 = vrot.lane.b32.xlu0 %v464_v27, %s991_s25 }
 0x206   : > { %467 = vrot.lane.b32.xlu1 %v463_v29, %s991_s25 }
 0x209   : > { %485 = vrot.lane.b32.xlu0 %v480_v31, %s991_s25 }
 0x20a   : > { %483 = vrot.lane.b32.xlu1 %v479_v32, %s991_s25 }
 0x20e   : > { %v835_v45 = vpop.eup %834 }
 0x20f   : > { %v837_v46 = vpop.eup %836  ;;  %v510_v47 = vsub.f32 1.0, %v835_v45 }
 0x210   : > { %v509_v49 = vsub.f32 1.0, %v837_v46 }
 0x277   : > { %v470_v48 = vpop.permute.xlu0 %469 }
 0x278   : > { %v474_v50 = vmul.f32 %v1177_v3, %v470_v48  ;;  %v468_v53 = vpop.permute.xlu1 %467 }
 0x279   : > { %v473_v55 = vmul.f32 %v1175_v2, %v468_v53 }
 0x27a   : > { %v539_v57 = vmul.f32 %v510_v47, %v474_v50  ;;  %v553_v58 = vsel %vm513_vm13, %v474_v50, 0.0  ;;  %v565_v59 = vmul.f32 %v835_v45, %v474_v50 }
 0x27b   : > { %v538_v51 = vmul.f32 %v509_v49, %v473_v55  ;;  %v552_v52 = vsel %vm513_vm13, %v473_v55, 0.0  ;;  %v486_v60 = vpop.permute.xlu0 %485  ;;  %v564_v4 = vmul.f32 %v837_v46, %v473_v55 }
 0x27c   : > { %v541_v61 = vsel %vm513_vm13, %v539_v57, 0.0  ;;  %v554_v62 = vadd.f32 %v553_v58, %v552_v52  ;;  %v490_v63 = vmul.f32 %v486_v60, %v476_v54  ;;  %v484_v0 = vpop.permute.xlu1 %483  ;;  %v567_v1 = vmul.f32 %v565_v59, %v565_v59 }
 0x27d   : > { %v540_v3 = vsel %vm513_vm13, %v538_v51, 0.0  ;;  %v489_v5 = vmul.f32 %v484_v0, %v475_v56  ;;  %v566_v20 = vmul.f32 %v564_v4, %v564_v4 }
 0x27e   : > { %v542_v6 = vadd.f32 %v541_v61, %v540_v3  ;;  %v555_v2 = vrot.slane %v554_v62, 4  ;;  %v512_v7 = vmul.f32 %v835_v45, %v490_v63  ;;  %v527_v11 = vsel %vm513_vm13, %v490_v63, 0.0 }
 0x27f   : > { %v569_v12 = vmul.f32 %v510_v47, %v490_v63  ;;  %v511_v13 = vmul.f32 %v837_v46, %v489_v5  ;;  %v526_v14 = vsel %vm513_vm13, %v489_v5, 0.0  ;;  %v568_v15 = vmul.f32 %v509_v49, %v489_v5 }
 0x280   : > { %v515_v16 = vsel %vm513_vm13, %v512_v7, 0.0  ;;  %v528_v17 = vadd.f32 %v527_v11, %v526_v14  ;;  %v556_v18 = vadd.f32 %v555_v2, %v554_v62  ;;  %v543_v19 = vrot.slane %v542_v6, 4 }
 0x281   : > { %v571_v21 = vmul.f32 %v569_v12, %v569_v12  ;;  %v514_v8 = vsel %vm513_vm13, %v511_v13, 0.0  ;;  %v570_v22 = vmul.f32 %v568_v15, %v568_v15 }
 0x282   : > { %v516_v23 = vadd.f32 %v515_v16, %v514_v8  ;;  %v529_v24 = vrot.slane %v528_v17, 4  ;;  %v557_v25 = vrot.slane %v556_v18, 2  ;;  %v544_v9 = vadd.f32 %v543_v19, %v542_v6 }
 0x283   : > { %v573_v26 = vadd.f32 %v571_v21, %v567_v1  ;;  %v572_v10 = vadd.f32 %v570_v22, %v566_v20 }
 0x284   : > { %v530_v27 = vadd.f32 %v529_v24, %v528_v17  ;;  %v517_v28 = vrot.slane %v516_v23, 4  ;;  %v558_v32 = vadd.f32 %v557_v25, %v556_v18  ;;  %v545_v34 = vrot.slane %v544_v9, 2 }
 0x285   : > { %v574_v29 = vsel %vm513_vm13, %v572_v10, 0.0  ;;  %v575_v30 = vsel %vm513_vm13, %v573_v26, 0.0  ;;  %v618_v10 = vlaneseq }
 0x286   : > { %v531_v31 = vrot.slane %v530_v27, 2  ;;  %v576_v33 = vadd.f32 %v575_v30, %v574_v29  ;;  %v518_v35 = vadd.f32 %v517_v28, %v516_v23  ;;  %v559_v40 = vrot.slane %v558_v32, 1 }
 0x287   : > { %v546_v42 = vadd.f32 %v545_v34, %v544_v9 }
 0x288   : > { %v532_v36 = vadd.f32 %v531_v31, %v530_v27  ;;  %v577_v37 = vrot.slane %v576_v33, 4  ;;  %v519_v38 = vrot.slane %v518_v35, 2  ;;  %v560_v47 = vadd.f32 %v559_v40, %v558_v32 }
 0x289   : > { %v547_v49 = vrot.slane %v546_v42, 1  ;;  %v619_v27 = vand.u32 127, %v618_v10 }
 0x28a   : > { %v533_v39 = vrot.slane %v532_v36, 1  ;;  %v578_v41 = vadd.f32 %v577_v37, %v576_v33  ;;  %v520_v45 = vadd.f32 %v519_v38, %v518_v35  ;;  %v561_v54 = vsel %vm513_vm13, %v560_v47, 0.0 }
 0x28b   : > { %v548_v56 = vadd.f32 %v547_v49, %v546_v42  ;;  %vm620_vm14 = vcmp.eq.s32.totalorder %v619_v27, 0 }
 0x28c   : > { %v534_v43 = vadd.f32 %v533_v39, %v532_v36  ;;  %v579_v44 = vrot.slane %v578_v41, 2  ;;  %v521_v53 = vrot.slane %v520_v45, 1 }
 0x28d   : > { %v549_v59 = vsel %vm513_vm13, %v548_v56, 0.0 }
 0x28e   : > { %v535_v46 = vsel %vm513_vm13, %v534_v43, 0.0  ;;  %v580_v48 = vadd.f32 %v579_v44, %v578_v41  ;;  %v522_v58 = vadd.f32 %v521_v53, %v520_v45 }
 0x28f   : > { %536 = vadd.xlane.f32.xlu0 %v535_v46 }
 0x290   : > { %v581_v50 = vrot.slane %v580_v48, 1  ;;  %v523_v51 = vsel %vm513_vm13, %v522_v58, 0.0 }
 0x292   : > { %v582_v55 = vadd.f32 %v581_v50, %v580_v48 }
 0x293   : > { %562 = vadd.xlane.f32.xlu0 %v561_v54 }
 0x294   : > { %v583_v57 = vsel %vm513_vm13, %v582_v55, 0.0 }
 0x295   : > { %584 = vadd.xlane.f32.xlu1 %v583_v57 }
 0x297   : > { %550 = vadd.xlane.f32.xlu0 %v549_v59 }
 0x299   : > { %524 = vadd.xlane.f32.xlu1 %v523_v51 }
 0x318   : > { %v537_v52 = vpop.xlane.xlu0 %536 }
 0x31c   : > { %v563_v60 = vpop.xlane.xlu0 %562 }
 0x31d   : > { %838 = vrcp.f32 %v563_v60 }
 0x31e   : > { %840 = vrcp.f32 %v537_v52  ;;  %v585_v61 = vpop.xlane.xlu1 %584 }
 0x31f   : > { %v604_v62 = vmul.f32 0.5, %v585_v61 }
 0x320   : > { %v551_v0 = vpop.xlane.xlu0 %550 }
 0x321   : > { %v605_v63 = vadd.f32 1.0, %v604_v62  ;;  %v591_v4 = vadd.f32 1e-15, %v551_v0 }
 0x322   : > { %v525_v1 = vpop.xlane.xlu1 %524 }
 0x323   : > { %842 = vlog2.f32 %v605_v63  ;;  %v586_v2 = vadd.f32 1e-15, %v525_v1 }
 0x32a   : > { %v839_v3 = vpop.eup %838 }
 0x32b   : > { %v841_v5 = vpop.eup %840  ;;  %v593_v6 = vmul.f32 %v839_v3, %v591_v4 }
 0x32c   : > { %v588_v7 = vmul.f32 %v841_v5, %v586_v2 }
 0x32d   : > { %v594_v12 = vsub.f32 1.0, %v593_v6 }
 0x32e   : > { %v589_v14 = vsub.f32 1.0, %v588_v7 }
 0x32f   : > { %v595_v16 = vmul.f32 %v594_v12, %v594_v12 }
 0x330   : > { %v843_v11 = vpop.eup %842  ;;  %v590_v17 = vmul.f32 %v589_v14, %v589_v14 }
 0x331   : > { %v607_v13 = vmul.f32 0.6931472, %v843_v11 }
 0x332   : > { %v596_v18 = vadd.f32 %v595_v16, %v590_v17 }
 0x333   : > { %v608_v15 = vadd.f32 1.0, %v607_v13 }
 0x334   : > { %v745_v19 = vmul.f32 -0.5, %v596_v18 }
 0x335   : > { %844 = vlog2.f32 %v608_v15 }
 0x336   : > { %v599_v20 = vmul.f32 1.442695, %v745_v19 }
 0x338   : > { %846 = vpow2.f32 %v599_v20 }
 0x342   : > { %v845_v21 = vpop.eup %844 }
 0x343   : > { %v610_v8 = vmul.f32 0.6931472, %v845_v21 }
 0x345   : > { %v611_v22 = vadd.f32 1.0, %v610_v8  ;;  %v847_v24 = vpop.eup %846 }
 0x346   : > { %v601_v25 = vadd.f32 1.0, %v847_v24 }
 0x347   : > { %v746_v23 = vmul.f32 -1.442695, %v611_v22 }
 0x349   : > { %848 = vpow2.f32 %v746_v23 }
 0x34a   : > { %850 = vrcp.f32 %v601_v25 }
 0x356   : > { %v849_v9 = vpop.eup %848 }
 0x357   : > { %v615_v26 = vadd.f32 1.0, %v849_v9  ;;  %v851_v28 = vpop.eup %850 }
 0x359   : > { %852 = vrcp.f32 %v615_v26 }
 0x366   : > { %v853_v29 = vpop.eup %852 }
 0x367   : > { %v621_v30 = vsel %vm620_vm14, %v851_v28, %v853_v29 }
 0x368   : > { %622 = vst [vmem:[%s201_s7] sm:$0xff] %v621_v30 }
 0x369   : > { %923 = shalt.err (!%p920_p4)
}
 0x36a   : > { %s924_s8 = scalar_lea.hbm %s1287_s19, 128  ;;  %s928_s17 = scalar_lea.hbm %s1326_s2, 256 }
 0x36b   : > { %p925_p3 = scmp.ne.s32.totalorder %s1287_s19, %s924_s8  ;;  %p929_p12 = scmp.lt.s32.totalorder %s1287_s19, %s1326_s2 }
 0x36c   : > { %p930_p8 = scmp.lt.s32.totalorder %s928_s17, %s924_s8 }
 0x36d   : > { %p926_p5 = pnand %p925_p3, %p1336_p1 }
 0x36e   : > { %p931_p6 = por %p930_p8, %p929_p12 }
 0x36f   : > { %p927_p11 = pneg %p926_p5 }
 0x371   : > { %p932_p13 = pnand %p931_p6, %p927_p11 }
 0x373   : > { %935 = shalt.err (!%p932_p13)
}
 0x374   : > { %761 = dma.vmem_to_hbm [thread:$0]  (%p1336_p1), %s638_s14, 128, %s1287_s19, %s624_s24  }
 0x375 PF: > { %s649_s26 = sand.u32 1, %s966_s9   ;;  %p1337_p9 = scmp.ne.s32.totalorder %s1332_s22, 0 }
 0x376   : > { %p1338_p7 = scmp.ge.s32.totalorder %s978_s12, 2  ;;  %s650_s27 = scalar_lea.sflag [#allocation5], %s649_s26 }
 0x378   : > { %p771_p10 = pnand %p1338_p7, %p1337_p9 }
 0x37a   : > { %p772_p0 = pneg %p771_p10 }
 0x37c   : > { %961 = dma.done.wait (%p772_p0), %s650_s27, 128  }
 0x37d   : > { %963 = vsyncadd (%p772_p0), %s650_s27, 4294967168  ;;  %p18_p2 = scmp.ge.s32.totalorder %s1036_s15, 4   ;;  %s1339_s9 = smov %s970_s10 }
 0x37e   : > { %s1340_s10 = smov %s974_s11  ;;  %s1341_s11 = smov %s1048_s18 }
 0x37f   : > { %s1342_s12 = smov %s1036_s15  ;;  %20 = sbr.rel (!%p18_p2) target bundleno = 7 (0x7), region = 86 }
 0x384   :  { %655 = vsyncpa [#allocation4], 1 }
 0x385   :  { %657 = vsyncpa [#allocation4 + $0x1], 1 }
 0x386   :  { %658 = vsyncpa [#allocation7], 1 }
 0x387   :  { %660 = vsyncpa [#allocation7 + $0x1], 1 }
 0x388   :  { %661 = vsyncpa [#allocation5], 1 }
 0x389   :  { %663 = vsyncpa [#allocation5 + $0x1], 1 }

</bundles_post_ra>
